<compile_context>
chip_gen: v6e
topology: v6e:2x2x1
jax: 0.10.0
libtpu: 0.0.40
codegen_flags: <defaults>
</compile_context>

<pallas_src>
import math

import jax
import jax.numpy as jnp
from jax.experimental import pallas as pl
from jax.experimental.pallas import tpu as pltpu


def _build_concat_kernel(widths):
    """Kernel: copy each input block into its column slice of the output block."""
    offsets = []
    off = 0
    for w in widths:
        offsets.append(off)
        off += w

    def kernel(*refs):
        out_ref = refs[-1]
        for i, (o, w) in enumerate(zip(offsets, widths)):
            out_ref[:, o:o + w] = refs[i][...]

    return kernel


def concat_pallas(arrays, dim):
    """Concatenate same-dtype arrays along `dim` with a Pallas copy kernel."""
    ndim = arrays[0].ndim
    dim = dim % ndim
    lead = arrays[0].shape[:dim]
    trail = arrays[0].shape[dim + 1:]
    dtype = arrays[0].dtype
    for a in arrays:
        assert a.shape[:dim] == lead and a.shape[dim + 1:] == trail
        assert a.dtype == dtype

    rows = math.prod(lead) if lead else 1
    trail_sz = math.prod(trail) if trail else 1
    widths = [a.shape[dim] * trail_sz for a in arrays]
    total = sum(widths)

    # 2-D views: (rows, C_i * trailing) — a reshape of contiguous data, no copy.
    x2d = [a.reshape(rows, w) for a, w in zip(arrays, widths)]

    # Row-tile sizing: inputs (total lanes) + output (total lanes), double-buffered,
    # kept under ~8 MiB so it also fits v5e's 16 MiB scoped-VMEM default.
    itemsize = jnp.dtype(dtype).itemsize
    vmem_budget = 8 * 1024 * 1024
    bytes_per_row = 4 * total * itemsize  # (in + out) * double-buffering
    rows_fit = max(1, vmem_budget // max(bytes_per_row, 1))
    if rows_fit >= rows:
        tr = rows  # full leading dim: always a legal block size
    else:
        tr = max(8, (rows_fit // 8) * 8)
    # TODO(synk): for rows == 1 with huge per-row width, also tile the lane dim
    # (needs per-input lane grids); not needed for typical NCHW channel concat.

    grid = (pl.cdiv(rows, tr),)

    out2d = pl.pallas_call(
        _build_concat_kernel(widths),
        out_shape=jax.ShapeDtypeStruct((rows, total), dtype),
        grid=grid,
        in_specs=[pl.BlockSpec((tr, w), lambda r: (r, 0)) for w in widths],
        out_specs=pl.BlockSpec((tr, total), lambda r: (r, 0)),
        compiler_params=pltpu.CompilerParams(
            dimension_semantics=("parallel",),
        ),
    )(*x2d)

    cat_size = sum(a.shape[dim] for a in arrays)
    return out2d.reshape(lead + (cat_size,) + trail)


def concat_forward(x, branches, dim=1):
    """Full Concat.forward: run branches, center-crop H/W to min, concat along dim."""
    outs = [b(x) for b in branches]
    h_min = min(o.shape[2] for o in outs)
    w_min = min(o.shape[3] for o in outs)
    cropped = []
    for o in outs:
        if (o.shape[2], o.shape[3]) != (h_min, w_min):
            d2 = (o.shape[2] - h_min) // 2
            d3 = (o.shape[3] - w_min) // 2
            o = o[:, :, d2:d2 + h_min, d3:d3 + w_min]
        cropped.append(o)
    return concat_pallas(cropped, dim)


if __name__ == "__main__":
    key = jax.random.PRNGKey(0)
    x = jax.random.normal(key, (2, 4, 16, 16), dtype=jnp.float32)

    # Two example branch "modules" (arbitrary nn.Modules in PyTorch).
    # Branch 1 produces a larger spatial map so the center-crop path is exercised.
    branches = [
        lambda t: t,
        lambda t: jnp.pad(2.0 * t, ((0, 0), (0, 0), (1, 1), (1, 1))),
    ]

    y = concat_forward(x, branches, dim=1)
    y = jax.block_until_ready(y)

    # Pure-JAX reference of the PyTorch forward.
    outs = [b(x) for b in branches]
    h = min(o.shape[2] for o in outs)
    w = min(o.shape[3] for o in outs)
    ref_inputs = []
    for o in outs:
        d2 = (o.shape[2] - h) // 2
        d3 = (o.shape[3] - w) // 2
        ref_inputs.append(o[:, :, d2:d2 + h, d3:d3 + w])
    y_ref = jnp.concatenate(ref_inputs, axis=1)

    assert y.shape == y_ref.shape and y.dtype == y_ref.dtype
    assert bool(jnp.array_equal(y, y_ref))

    print("KERNEL_OK")
</pallas_src>

<mosaic_0001>
module attributes {stable_mosaic.version = 11 : i64} {
  func.func @kernel(%arg0: i32, %arg1: memref<2x1024xf32, #tpu.memory_space<vmem>>, %arg2: memref<2x1024xf32, #tpu.memory_space<vmem>>, %arg3: memref<2x2048xf32, #tpu.memory_space<vmem>>) attributes {dimension_semantics = [#tpu.dimension_semantics<parallel>], iteration_bounds = array<i64: 1>, scalar_prefetch = 0 : i64, scratch_operands = 0 : i64, tpu.core_type = #tpu.core_type<tc>, window_params = [{transform_indices = @transform_0, window_bounds = array<i64: 2, 1024>}, {transform_indices = @transform_1, window_bounds = array<i64: 2, 1024>}, {transform_indices = @transform_2, window_bounds = array<i64: 2, 2048>}]} {
    %c0 = arith.constant 0 : index
    %c0_0 = arith.constant 0 : index
    %0 = vector.load %arg1[%c0, %c0_0] : memref<2x1024xf32, #tpu.memory_space<vmem>>, vector<2x1024xf32>
    %c0_1 = arith.constant 0 : index
    %c0_2 = arith.constant 0 : index
    %1 = vector.load %arg3[%c0_1, %c0_2] : memref<2x2048xf32, #tpu.memory_space<vmem>>, vector<2x1024xf32>
    tpu.vector_store %arg3[%c0_1, %c0_2], %0 {strides = array<i32>} : memref<2x2048xf32, #tpu.memory_space<vmem>>, vector<2x1024xf32>,
    %c0_3 = arith.constant 0 : index
    %c0_4 = arith.constant 0 : index
    %2 = vector.load %arg2[%c0_3, %c0_4] : memref<2x1024xf32, #tpu.memory_space<vmem>>, vector<2x1024xf32>
    %c0_5 = arith.constant 0 : index
    %c1024 = arith.constant 1024 : index
    %3 = vector.load %arg3[%c0_5, %c1024] : memref<2x2048xf32, #tpu.memory_space<vmem>>, vector<2x1024xf32>
    tpu.vector_store %arg3[%c0_5, %c1024], %2 {strides = array<i32>} : memref<2x2048xf32, #tpu.memory_space<vmem>>, vector<2x1024xf32>,
    return
  }
  func.func @transform_0(%arg0: i32) -> (i32, i32) {
    %c0_i32 = arith.constant 0 : i32
    %c0_i32_0 = arith.constant 0 : i32
    return %arg0, %c0_i32 : i32, i32
  }
  func.func @transform_1(%arg0: i32) -> (i32, i32) {
    %c0_i32 = arith.constant 0 : i32
    %c0_i32_0 = arith.constant 0 : i32
    return %arg0, %c0_i32 : i32, i32
  }
  func.func @transform_2(%arg0: i32) -> (i32, i32) {
    %c0_i32 = arith.constant 0 : i32
    %c0_i32_0 = arith.constant 0 : i32
    return %arg0, %c0_i32 : i32, i32
  }
}

</mosaic_0001>

<bundles_post_ra>
// kernel: tpu_custom_call.1
= control target key start
LH: loop header
LB: loop body
LE: loop exit
PB: predicated region body
PF: predicated region fallthrough
CT: control target
= control target key end

     0   :  { %7 = vsyncpa [#allocation3], 0  ;;  %s156_s0 = inlined_call_operand.hbm [shape: f32[2,1024], index: 0, kind: input, shape index: {}]   ;;  %s157_s1 = inlined_call_operand.hbm [shape: f32[2,1024], index: 1, kind: input, shape index: {}]   ;;  %s158_s2 = inlined_call_operand.hbm [shape: f32[2,2048], index: 2, kind: output, shape index: {}]  }
   0x1   :  { %8 = vsyncpa [#allocation6], 0 }
   0x2   :  { %9 = vsyncpa [#allocation4], 0  ;;  %s129_s9 = smov [#allocation2]   ;;  %s130_s11 = smov [#allocation5]  }
   0x3   :  { %s16_s10 = sshll.u32 %s129_s9, 4  ;;  %s26_s12 = sshll.u32 %s130_s11, 4  ;;  %s17_s10 = int_to_ptr.vmem [resolvable:$true] %s16_s10  ;;  %s27_s12 = int_to_ptr.vmem [resolvable:$true] %s26_s12 }
   0x4   :  { %s71_s13 = scalar_lea.vmem %s17_s10, 256  ;;  %p76_p1 = scmp.lt.s32.totalorder %s17_s10, %s17_s10 }
   0x5   :  { %p72_p0 = scmp.ne.s32.totalorder %s17_s10, %s71_s13  ;;  %p77_p2 = scmp.lt.s32.totalorder %s71_s13, %s71_s13 }
   0x7   :  { %p78_p3 = por %p77_p2, %p76_p1 }
   0x9   :  { %p79_p4 = pnand %p78_p3, %p72_p0 }
   0xb   :  { %82 = shalt.err (!%p79_p4)
}
   0xc   :  { %19 = dma.hbm_to_vmem [thread:$0]  %s156_s0, 256, %s17_s10, [#allocation3]  }
   0xd   :  { %s91_s16 = scalar_lea.vmem %s27_s12, 256  ;;  %p96_p6 = scmp.lt.s32.totalorder %s27_s12, %s27_s12 }
   0xe   :  { %p92_p5 = scmp.ne.s32.totalorder %s27_s12, %s91_s16  ;;  %p97_p7 = scmp.lt.s32.totalorder %s91_s16, %s91_s16 }
  0x10   :  { %p98_p8 = por %p97_p7, %p96_p6 }
  0x12   :  { %p99_p9 = pnand %p98_p8, %p92_p5 }
  0x14   :  { %102 = shalt.err (!%p99_p9)
}
  0x15   :  { %29 = dma.hbm_to_vmem [thread:$0]  %s157_s1, 256, %s27_s12, [#allocation6]  }
  0x16   :  { %123 = dma.done.wait [#allocation3], 256  }
  0x17   :  { %124 = vsyncadd [#allocation3], 4294967040 }
  0x18   :  { %125 = dma.done.wait [#allocation6], 256  }
  0x19   :  { %126 = vsyncadd [#allocation6], 4294967040  ;;  %s131_s19 = smov [#allocation7]   ;;  %v36_v0 = vld [vmem:[#allocation2] sm:$0xff]  ;;  %v37_v1 = vld [vmem:[#allocation2 + $0x8] sm:$0xff] }
  0x1a   :  { %s50_s20 = sshll.u32 %s131_s19, 4  ;;  %v40_v2 = vld [vmem:[#allocation5] sm:$0xff]  ;;  %38 = vst [vmem:[#allocation7] sm:$0xff] %v36_v0  ;;  %39 = vst [vmem:[#allocation7 + $0x8] sm:$0xff] %v37_v1  ;;  %v41_v3 = vld [vmem:[#allocation5 + $0x8] sm:$0xff]  ;;  %s51_s20 = int_to_ptr.vmem [resolvable:$true] %s50_s20 }
  0x1b   :  { %42 = vst [vmem:[#allocation7 + $0x10] sm:$0xff] %v40_v2  ;;  %43 = vst [vmem:[#allocation7 + $0x18] sm:$0xff] %v41_v3  ;;  %s103_s0 = scalar_lea.vmem %s51_s20, 512  ;;  %p108_p11 = scmp.lt.s32.totalorder %s51_s20, %s51_s20 }
  0x1c   :  { %p104_p10 = scmp.ne.s32.totalorder %s51_s20, %s103_s0  ;;  %p109_p12 = scmp.lt.s32.totalorder %s103_s0, %s103_s0 }
  0x1e   :  { %p110_p13 = por %p109_p12, %p108_p11 }
  0x20   :  { %p111_p0 = pnand %p110_p13, %p104_p10 }
  0x22   :  { %114 = shalt.err (!%p111_p0)
}
  0x23   :  { %53 = dma.vmem_to_hbm [thread:$0]  %s51_s20, 512, %s158_s2, [#allocation4]  }
  0x24   :  { %127 = dma.done.wait [#allocation4], 512  }
  0x25   :  { %128 = vsyncadd [#allocation4], 4294966784 }
  0x26   :  { %57 = vsyncpa [#allocation3], 1 }
  0x27   :  { %58 = vsyncpa [#allocation6], 1 }
  0x28   :  { %59 = vsyncpa [#allocation4], 1 }

</bundles_post_ra>
